<compile_context>
chip_gen: v6e
topology: v6e:2x2x1
jax: 0.10.0
libtpu: 0.0.40
codegen_flags: <defaults>
</compile_context>

<pallas_src>
import functools

import jax
import jax.numpy as jnp
from jax.experimental import pallas as pl
from jax.experimental.pallas import tpu as pltpu

N_FEATURES = 4
N_ACTIONS = 9
HIDDEN = 128
OUT_PAD = 16  # fused output rows: row 0 = value, rows 1..9 = logits, rest zero


def _policy_kernel(xT_ref, w1T_ref, b1T_ref, w2T_ref, b2T_ref, out_ref, *,
                   compute_dtype):
    # xT: [4, tb]; w1T: [256, 4]; b1T: [256, 1]; w2T: [16, 256]; b2T: [16, 1]
    xT = xT_ref[...].astype(compute_dtype)
    w1T = w1T_ref[...].astype(compute_dtype)

    # Fused layer 1 (critic || actor) + tanh over one [256, tb] slab.
    h = jnp.tanh(
        jnp.dot(w1T, xT, preferred_element_type=jnp.float32) + b1T_ref[...]
    ).astype(compute_dtype)

    # Fused block-diagonal layer 2 -> lane-dense [16, tb] output slab.
    out_ref[...] = (
        jnp.dot(w2T_ref[...].astype(compute_dtype), h,
                preferred_element_type=jnp.float32)
        + b2T_ref[...]
    )


def _fuse_params(params):
    """Pack the 8 per-layer params into 4 fused, transposed operands."""
    (w1c, b1c, w2c, b2c, w1a, b1a, w2a, b2a) = params
    # Weights stored as [in, out]; the kernel wants [out, in] (left operand).

    # Layer 1: rows 0..127 critic, 128..255 actor -> [256, 4] / [256, 1].
    w1T = jnp.concatenate([w1c.T, w1a.T], axis=0)
    b1T = jnp.concatenate([b1c.T, b1a.T], axis=0)

    # Layer 2: block-diagonal [16, 256] (value row 0 <- critic half of h,
    # logits rows 1..9 <- actor half of h).
    w2T = jnp.zeros((OUT_PAD, 2 * HIDDEN), jnp.float32)
    w2T = w2T.at[0:1, :HIDDEN].set(w2c.T)
    w2T = w2T.at[1:1 + N_ACTIONS, HIDDEN:].set(w2a.T)

    b2T = jnp.zeros((OUT_PAD, 1), jnp.float32)
    b2T = b2T.at[0:1, :].set(b2c.T)
    b2T = b2T.at[1:1 + N_ACTIONS, :].set(b2a.T)
    return w1T, b1T, w2T, b2T


def policy_forward(x, params, *, tb=2048, min_pallas_batch=0,
                   compute_dtype=jnp.float32):
    """x: [B, 4] float32 -> (state_values [B, 1], action_logits [B, 9]).

    tb: batch tile (lane axis), rounded to a multiple of 128.  1K-4K rows is
        a good range at large B; per-step VMEM is only ~tb KiB (f32 h slab).
    min_pallas_batch: below this batch size fall back to plain XLA (the fixed
        kernel-launch / grid overhead dominates tiny single-env RL rollouts).
    compute_dtype: jnp.bfloat16 is a small optional win on v6e/v7x (bf16-native
        MXU/EUP, halves the h slab); keep f32 on v5e / for exact numerics.
    """
    B = x.shape[0]
    if B < min_pallas_batch:
        return policy_reference(x, params)

    w1T, b1T, w2T, b2T = _fuse_params(params)

    # Batch tiling: lane axis must be a multiple of 128.
    b_pad = pl.cdiv(B, 128) * 128
    tb = max(128, (min(tb, b_pad) // 128) * 128)
    # v7x has 2 TensorCores; keep >= 2 "parallel" grid steps when batch allows.
    if b_pad // tb < 2 and b_pad >= 256:
        tb = max(128, ((b_pad // 2) // 128) * 128)
    Bp = pl.cdiv(B, tb) * tb

    xp = x if Bp == B else jnp.pad(x, ((0, Bp - B), (0, 0)))
    xT = xp.T  # [4, Bp] — 4 contiguous runs of Bp*4 bytes per DMA'd tile.

    weight_bytes = 4 * (w1T.size + b1T.size + w2T.size + b2T.size)
    cost = pl.CostEstimate(
        flops=2 * Bp * (N_FEATURES * 2 * HIDDEN + 2 * HIDDEN * OUT_PAD),
        transcendentals=Bp * 2 * HIDDEN,
        bytes_accessed=Bp * (N_FEATURES + OUT_PAD) * 4 + weight_bytes,
    )

    out = pl.pallas_call(
        functools.partial(_policy_kernel, compute_dtype=compute_dtype),
        out_shape=jax.ShapeDtypeStruct((OUT_PAD, Bp), jnp.float32),
        grid=(Bp // tb,),
        in_specs=[
            pl.BlockSpec((N_FEATURES, tb), lambda i: (0, i)),
            # Fused weights/biases: constant index_map -> resident in VMEM.
            pl.BlockSpec((2 * HIDDEN, N_FEATURES), lambda i: (0, 0)),
            pl.BlockSpec((2 * HIDDEN, 1), lambda i: (0, 0)),
            pl.BlockSpec((OUT_PAD, 2 * HIDDEN), lambda i: (0, 0)),
            pl.BlockSpec((OUT_PAD, 1), lambda i: (0, 0)),
        ],
        out_specs=pl.BlockSpec((OUT_PAD, tb), lambda i: (0, i)),
        compiler_params=pltpu.CompilerParams(
            dimension_semantics=("parallel",)),
        cost_estimate=cost,
    )(xT, w1T, b1T, w2T, b2T)

    state_values = out[0:1, :B].T            # [B, 1]
    action_logits = out[1:1 + N_ACTIONS, :B].T  # [B, 9]
    return state_values, action_logits


def init_params(key):
    """Deterministic init mimicking PyTorch Linear default (U[-1/sqrt(fan_in), +])."""
    def linear(k, fan_in, fan_out):
        kw, kb = jax.random.split(k)
        bound = 1.0 / jnp.sqrt(fan_in)
        w = jax.random.uniform(kw, (fan_in, fan_out), jnp.float32,
                               -bound, bound)
        b = jax.random.uniform(kb, (1, fan_out), jnp.float32, -bound, bound)
        return w, b

    k1, k2, k3, k4 = jax.random.split(key, 4)
    w1c, b1c = linear(k1, N_FEATURES, HIDDEN)
    w2c, b2c = linear(k2, HIDDEN, 1)
    w1a, b1a = linear(k3, N_FEATURES, HIDDEN)
    w2a, b2a = linear(k4, HIDDEN, N_ACTIONS)
    return (w1c, b1c, w2c, b2c, w1a, b1a, w2a, b2a)


def policy_reference(x, params):
    (w1c, b1c, w2c, b2c, w1a, b1a, w2a, b2a) = params
    hc = jnp.tanh(x @ w1c + b1c)
    v = hc @ w2c + b2c
    ha = jnp.tanh(x @ w1a + b1a)
    logits = ha @ w2a + b2a
    return v, logits


if __name__ == "__main__":
    key = jax.random.PRNGKey(0)
    kx, kp = jax.random.split(key)

    # Small demo batch; tb clamps to 128 (one lane-dense tile).
    # TODO(synk): for single-env RL rollouts (tiny B) set min_pallas_batch>0
    # so the plain-XLA path is used; the Pallas path shines at B >= ~1024.
    B = 32
    x = jax.random.normal(kx, (B, N_FEATURES), jnp.float32)
    params = init_params(kp)

    fwd = jax.jit(functools.partial(policy_forward, tb=128))
    v, logits = fwd(x, params)
    jax.block_until_ready((v, logits))

    v_ref, logits_ref = policy_reference(x, params)
    assert v.shape == (B, 1) and logits.shape == (B, N_ACTIONS)
    assert jnp.allclose(v, v_ref, atol=1e-5, rtol=1e-5)
    assert jnp.allclose(logits, logits_ref, atol=1e-5, rtol=1e-5)

    print("KERNEL_OK")
</pallas_src>

<mosaic_0001>
module attributes {stable_mosaic.version = 11 : i64} {
  func.func @_policy_kernel(%arg0: i32, %arg1: memref<4x128xf32, #tpu.memory_space<vmem>>, %arg2: memref<256x4xf32, #tpu.memory_space<vmem>>, %arg3: memref<256x1xf32, #tpu.memory_space<vmem>>, %arg4: memref<16x256xf32, #tpu.memory_space<vmem>>, %arg5: memref<16x1xf32, #tpu.memory_space<vmem>>, %arg6: memref<16x128xf32, #tpu.memory_space<vmem>>) attributes {dimension_semantics = [#tpu.dimension_semantics<parallel>], iteration_bounds = array<i64: 1>, scalar_prefetch = 0 : i64, scratch_operands = 0 : i64, tpu.core_type = #tpu.core_type<tc>, window_params = [{transform_indices = @transform_0, window_bounds = array<i64: 4, 128>}, {pipeline_mode = #tpu.pipeline_mode<synchronous>, transform_indices = @transform_1, window_bounds = array<i64: 256, 4>}, {pipeline_mode = #tpu.pipeline_mode<synchronous>, transform_indices = @transform_2, window_bounds = array<i64: 256, 1>}, {pipeline_mode = #tpu.pipeline_mode<synchronous>, transform_indices = @transform_3, window_bounds = array<i64: 16, 256>}, {pipeline_mode = #tpu.pipeline_mode<synchronous>, transform_indices = @transform_4, window_bounds = array<i64: 16, 1>}, {transform_indices = @transform_5, window_bounds = array<i64: 16, 128>}]} {
    %c0 = arith.constant 0 : index
    %c0_0 = arith.constant 0 : index
    %0 = vector.load %arg1[%c0, %c0_0] : memref<4x128xf32, #tpu.memory_space<vmem>>, vector<4x128xf32>
    %c0_1 = arith.constant 0 : index
    %c0_2 = arith.constant 0 : index
    %1 = vector.load %arg2[%c0_1, %c0_2] : memref<256x4xf32, #tpu.memory_space<vmem>>, vector<256x4xf32>
    %cst = arith.constant dense<0.000000e+00> : vector<256x128xf32>
    %2 = tpu.matmul %1, %0, %cst {dimension_numbers = #tpu.dot_dimension_numbers<[1], [0], [0], [1], [0, 0, 1, 1], [], []>} : vector<256x4xf32>, vector<4x128xf32>, vector<256x128xf32> -> vector<256x128xf32>
    %c0_3 = arith.constant 0 : index
    %c0_4 = arith.constant 0 : index
    %3 = vector.load %arg3[%c0_3, %c0_4] : memref<256x1xf32, #tpu.memory_space<vmem>>, vector<256x1xf32>
    %4 = vector.broadcast %3 : vector<256x1xf32> to vector<256x128xf32>
    %5 = arith.addf %2, %4 : vector<256x128xf32>
    %6 = math.tanh %5 : vector<256x128xf32>
    %c0_5 = arith.constant 0 : index
    %c0_6 = arith.constant 0 : index
    %7 = vector.load %arg4[%c0_5, %c0_6] : memref<16x256xf32, #tpu.memory_space<vmem>>, vector<16x256xf32>
    %cst_7 = arith.constant dense<0.000000e+00> : vector<16x128xf32>
    %8 = tpu.matmul %7, %6, %cst_7 {dimension_numbers = #tpu.dot_dimension_numbers<[1], [0], [0], [1], [0, 0, 1, 1], [], []>} : vector<16x256xf32>, vector<256x128xf32>, vector<16x128xf32> -> vector<16x128xf32>
    %c0_8 = arith.constant 0 : index
    %c0_9 = arith.constant 0 : index
    %9 = vector.load %arg5[%c0_8, %c0_9] : memref<16x1xf32, #tpu.memory_space<vmem>>, vector<16x1xf32>
    %10 = vector.broadcast %9 : vector<16x1xf32> to vector<16x128xf32>
    %11 = arith.addf %8, %10 : vector<16x128xf32>
    %c0_10 = arith.constant 0 : index
    %c0_11 = arith.constant 0 : index
    %12 = vector.load %arg6[%c0_10, %c0_11] : memref<16x128xf32, #tpu.memory_space<vmem>>, vector<16x128xf32>
    tpu.vector_store %arg6[%c0_10, %c0_11], %11 {strides = array<i32>} : memref<16x128xf32, #tpu.memory_space<vmem>>, vector<16x128xf32>,
    return
  }
  func.func @transform_0(%arg0: i32) -> (i32, i32) {
    %c0_i32 = arith.constant 0 : i32
    %c0_i32_0 = arith.constant 0 : i32
    return %c0_i32, %arg0 : i32, i32
  }
  func.func @transform_1(%arg0: i32) -> (i32, i32) {
    %c0_i32 = arith.constant 0 : i32
    %c0_i32_0 = arith.constant 0 : i32
    %c0_i32_1 = arith.constant 0 : i32
    return %c0_i32, %c0_i32_0 : i32, i32
  }
  func.func @transform_2(%arg0: i32) -> (i32, i32) {
    %c0_i32 = arith.constant 0 : i32
    %c0_i32_0 = arith.constant 0 : i32
    %c0_i32_1 = arith.constant 0 : i32
    return %c0_i32, %c0_i32_0 : i32, i32
  }
  func.func @transform_3(%arg0: i32) -> (i32, i32) {
    %c0_i32 = arith.constant 0 : i32
    %c0_i32_0 = arith.constant 0 : i32
    %c0_i32_1 = arith.constant 0 : i32
    return %c0_i32, %c0_i32_0 : i32, i32
  }
  func.func @transform_4(%arg0: i32) -> (i32, i32) {
    %c0_i32 = arith.constant 0 : i32
    %c0_i32_0 = arith.constant 0 : i32
    %c0_i32_1 = arith.constant 0 : i32
    return %c0_i32, %c0_i32_0 : i32, i32
  }
  func.func @transform_5(%arg0: i32) -> (i32, i32) {
    %c0_i32 = arith.constant 0 : i32
    %c0_i32_0 = arith.constant 0 : i32
    return %c0_i32, %arg0 : i32, i32
  }
}

</mosaic_0001>

<bundles_post_ra>
// kernel: policy_forward.1
= control target key start
LH: loop header
LB: loop body
LE: loop exit
PB: predicated region body
PF: predicated region fallthrough
CT: control target
= control target key end

     0   :  { %vm342_vm0 = vcmask 1043456   ;;  %vm245_vm1 = vcmask 31744   ;;  %v921_v3 = vmov 0   ;;  %s1251_s0 = inlined_call_operand.vmem [shape: f32[4,128], index: 0, kind: input, shape index: {}]   ;;  %s1252_s1 = inlined_call_operand.vmem [shape: f32[256,4], index: 1, kind: input, shape index: {}]   ;;  %s1253_s2 = inlined_call_operand.vmem [shape: f32[256,1], index: 2, kind: input, shape index: {}]   ;;  %s1254_s4 = inlined_call_operand.vmem [shape: f32[16,1], index: 4, kind: input, shape index: {}]   ;;  %s1255_s3 = inlined_call_operand.vmem [shape: f32[16,256], index: 3, kind: input, shape index: {}]   ;;  %s1256_s5 = inlined_call_operand.vmem [shape: f32[16,128], index: 5, kind: output, shape index: {}]  }
   0x1   :  { %v20_v0 = vld [vmem:[%s1251_s0] sm:$0xf]  ;;  %v22_v2 = vld [vmem:[%s1252_s1 + $0x8] sm:$0xff]  ;;  %856 = vset.pattern.permute.xlu1 %v921_v3  ;;  %855 = vset.pattern.permute.xlu0 %v921_v3  ;;  %v23_v4 = vld [vmem:[%s1252_s1 + $0x10] sm:$0xff] }
   0x2   :  { %v21_v1 = vld [vmem:[%s1252_s1] sm:$0xff]  ;;  %804 = vmatprep.subr.msk.mxu0 %vm342_vm0, %v20_v0  ;;  %v83_v5 = vld [vmem:[%s1253_s2 + $0xf0] sm:$0xff]  ;;  %v24_v6 = vld [vmem:[%s1252_s1 + $0x18] sm:$0xff] }
   0x3   :  { %806 = vmatprep.mubr.msk.f32.mxu0 %vm245_vm1, %v21_v1  ;;  %805 = vmatpush3.msk.msra.mxu0 %vm342_vm0, %v20_v0  ;;  %v67_v7 = vld [vmem:[%s1253_s2 + $0x70] sm:$0xff]  ;;  %v25_v8 = vld [vmem:[%s1252_s1 + $0x20] sm:$0xff]  ;;  %v26_v9 = vld [vmem:[%s1252_s1 + $0x28] sm:$0xff] }
   0x4   :  { %807 = vmatmul.mubr.msk.f32.vlgmr.msra.gmra.mxu0 %vm245_vm1, %v22_v2  ;;  %237 = vperm.xlu1 %856, %v83_v5   ;;  %v66_v10 = vld [vmem:[%s1253_s2 + $0x68] sm:$0xff]  ;;  %v84_v11 = vld [vmem:[%s1253_s2 + $0xf8] sm:$0xff]  ;;  %v27_v12 = vld [vmem:[%s1252_s1 + $0x30] sm:$0xff] }
   0x5   :  { %809 = vmatprep.mubr.msk.f32.mxu0 %vm245_vm1, %v23_v4  ;;  %242 = vperm.xlu0 %855, %v84_v11   ;;  %v68_v13 = vld [vmem:[%s1253_s2 + $0x78] sm:$0xff]  ;;  %v65_v15 = vld [vmem:[%s1253_s2 + $0x60] sm:$0xff]  ;;  %v82_v17 = vld [vmem:[%s1253_s2 + $0xe8] sm:$0xff] }
   0x6   :  { %v28_v14 = vld [vmem:[%s1252_s1 + $0x38] sm:$0xff]  ;;  %v29_v16 = vld [vmem:[%s1252_s1 + $0x40] sm:$0xff]  ;;  %v30_v18 = vld [vmem:[%s1252_s1 + $0x48] sm:$0xff] }
   0x7   :  { %v64_v19 = vld [vmem:[%s1253_s2 + $0x58] sm:$0xff]  ;;  %v31_v20 = vld [vmem:[%s1252_s1 + $0x50] sm:$0xff]  ;;  %v81_v21 = vld [vmem:[%s1253_s2 + $0xe0] sm:$0xff] }
   0x8   :  { %810 = vmatmul.mubr.msk.f32.gmra.mxu0 %vm245_vm1, %v24_v6  ;;  %157 = vperm.xlu1 %856, %v67_v7   ;;  %v32_v22 = vld [vmem:[%s1252_s1 + $0x58] sm:$0xff]  ;;  %v63_v23 = vld [vmem:[%s1253_s2 + $0x50] sm:$0xff]  ;;  %v33_v24 = vld [vmem:[%s1252_s1 + $0x60] sm:$0xff] }
   0x9   :  { %812 = vmatprep.mubr.msk.f32.mxu0 %vm245_vm1, %v25_v8  ;;  %162 = vperm.xlu0 %855, %v68_v13   ;;  %v80_v25 = vld [vmem:[%s1253_s2 + $0xd8] sm:$0xff]  ;;  %v34_v26 = vld [vmem:[%s1252_s1 + $0x68] sm:$0xff]  ;;  %v35_v28 = vld [vmem:[%s1252_s1 + $0x70] sm:$0xff] }
   0xa   :  { %v62_v27 = vld [vmem:[%s1253_s2 + $0x48] sm:$0xff]  ;;  %v79_v29 = vld [vmem:[%s1253_s2 + $0xd0] sm:$0xff]  ;;  %v36_v30 = vld [vmem:[%s1252_s1 + $0x78] sm:$0xff] }
   0xb   :  { %v61_v31 = vld [vmem:[%s1253_s2 + $0x40] sm:$0xff]  ;;  %v78_v33 = vld [vmem:[%s1253_s2 + $0xc8] sm:$0xff]  ;;  %v60_v35 = vld [vmem:[%s1253_s2 + $0x38] sm:$0xff] }
   0xc   :  { %813 = vmatmul.mubr.msk.f32.gmra.mxu0 %vm245_vm1, %v26_v9  ;;  %152 = vperm.xlu1 %856, %v66_v10   ;;  %v37_v32 = vld [vmem:[%s1252_s1 + $0x80] sm:$0xff]  ;;  %v38_v34 = vld [vmem:[%s1252_s1 + $0x88] sm:$0xff]  ;;  %v39_v36 = vld [vmem:[%s1252_s1 + $0x90] sm:$0xff] }
   0xd   :  { %815 = vmatprep.mubr.msk.f32.mxu0 %vm245_vm1, %v27_v12  ;;  %232 = vperm.xlu0 %855, %v82_v17   ;;  %v77_v37 = vld [vmem:[%s1253_s2 + $0xc0] sm:$0xff]  ;;  %v40_v38 = vld [vmem:[%s1252_s1 + $0x98] sm:$0xff]  ;;  %v59_v39 = vld [vmem:[%s1253_s2 + $0x30] sm:$0xff] }
   0xe   :  { %v41_v40 = vld [vmem:[%s1252_s1 + $0xa0] sm:$0xff]  ;;  %v76_v41 = vld [vmem:[%s1253_s2 + $0xb8] sm:$0xff]  ;;  %v42_v42 = vld [vmem:[%s1252_s1 + $0xa8] sm:$0xff] }
   0xf   :  { %v58_v43 = vld [vmem:[%s1253_s2 + $0x28] sm:$0xff]  ;;  %v43_v44 = vld [vmem:[%s1252_s1 + $0xb0] sm:$0xff]  ;;  %v44_v46 = vld [vmem:[%s1252_s1 + $0xb8] sm:$0xff] }
  0x10   :  { %816 = vmatmul.mubr.msk.f32.gmra.mxu0 %vm245_vm1, %v28_v14  ;;  %147 = vperm.xlu1 %856, %v65_v15   ;;  %v75_v45 = vld [vmem:[%s1253_s2 + $0xb0] sm:$0xff]  ;;  %v57_v47 = vld [vmem:[%s1253_s2 + $0x20] sm:$0xff]  ;;  %v74_v49 = vld [vmem:[%s1253_s2 + $0xa8] sm:$0xff] }
  0x11   :  { %818 = vmatprep.mubr.msk.f32.mxu0 %vm245_vm1, %v29_v16  ;;  %227 = vperm.xlu0 %855, %v81_v21   ;;  %v45_v48 = vld [vmem:[%s1252_s1 + $0xc0] sm:$0xff]  ;;  %v46_v50 = vld [vmem:[%s1252_s1 + $0xc8] sm:$0xff]  ;;  %v56_v51 = vld [vmem:[%s1253_s2 + $0x18] sm:$0xff] }
  0x12   :  { %v47_v52 = vld [vmem:[%s1252_s1 + $0xd0] sm:$0xff]  ;;  %v73_v53 = vld [vmem:[%s1253_s2 + $0xa0] sm:$0xff]  ;;  %v48_v54 = vld [vmem:[%s1252_s1 + $0xd8] sm:$0xff] }
  0x13   :  { %v55_v55 = vld [vmem:[%s1253_s2 + $0x10] sm:$0xff]  ;;  %v49_v56 = vld [vmem:[%s1252_s1 + $0xe0] sm:$0xff]  ;;  %v72_v57 = vld [vmem:[%s1253_s2 + $0x98] sm:$0xff] }
  0x14   :  { %819 = vmatmul.mubr.msk.f32.gmra.mxu0 %vm245_vm1, %v30_v18  ;;  %142 = vperm.xlu1 %856, %v64_v19   ;;  %v50_v58 = vld [vmem:[%s1252_s1 + $0xe8] sm:$0xff]  ;;  %v51_v60 = vld [vmem:[%s1252_s1 + $0xf0] sm:$0xff]  ;;  %v52_v62 = vld [vmem:[%s1252_s1 + $0xf8] sm:$0xff] }
  0x15   :  { %821 = vmatprep.mubr.msk.f32.mxu0 %vm245_vm1, %v31_v20  ;;  %222 = vperm.xlu0 %855, %v80_v25   ;;  %v54_v59 = vld [vmem:[%s1253_s2 + $0x8] sm:$0xff]  ;;  %v71_v61 = vld [vmem:[%s1253_s2 + $0x90] sm:$0xff]  ;;  %v53_v63 = vld [vmem:[%s1253_s2] sm:$0xff] }
  0x16   :  { %v70_v0 = vld [vmem:[%s1253_s2 + $0x88] sm:$0xff]  ;;  %v69_v2 = vld [vmem:[%s1253_s2 + $0x80] sm:$0xff] }
  0x17   :  { %v608_v1 = vld [vmem:[%s1254_s4 + $0x8] sm:$0xff]  ;;  %v607_v3 = vld [vmem:[%s1254_s4] sm:$0xff] }
  0x18   :  { %822 = vmatmul.mubr.msk.f32.gmra.mxu0 %vm245_vm1, %v32_v22  ;;  %137 = vperm.xlu1 %856, %v63_v23   ;;  %v604_v4 = vld [vmem:[%s1255_s3 + $0x8] sm:$0xff] }
  0x19   :  { %824 = vmatprep.mubr.msk.f32.mxu0 %vm245_vm1, %v33_v24  ;;  %217 = vperm.xlu0 %855, %v79_v29  }
  0x1a   :  { %683 = vmatprep.mubr.f32.mxu1 %v604_v4 }
  0x1c   :  { %825 = vmatmul.mubr.msk.f32.gmra.mxu0 %vm245_vm1, %v34_v26  ;;  %132 = vperm.xlu1 %856, %v62_v27  }
  0x1d   :  { %827 = vmatprep.mubr.msk.f32.mxu0 %vm245_vm1, %v35_v28  ;;  %212 = vperm.xlu0 %855, %v78_v33  }
  0x20   :  { %828 = vmatmul.mubr.msk.f32.gmra.mxu0 %vm245_vm1, %v36_v30  ;;  %127 = vperm.xlu1 %856, %v61_v31  }
  0x21   :  { %830 = vmatprep.mubr.msk.f32.mxu0 %vm245_vm1, %v37_v32  ;;  %207 = vperm.xlu0 %855, %v77_v37  }
  0x24   :  { %831 = vmatmul.mubr.msk.f32.gmra.mxu0 %vm245_vm1, %v38_v34  ;;  %122 = vperm.xlu1 %856, %v60_v35  }
  0x25   :  { %833 = vmatprep.mubr.msk.f32.mxu0 %vm245_vm1, %v39_v36  ;;  %202 = vperm.xlu0 %855, %v76_v41  }
  0x28   :  { %834 = vmatmul.mubr.msk.f32.gmra.mxu0 %vm245_vm1, %v40_v38  ;;  %117 = vperm.xlu1 %856, %v59_v39  }
  0x29   :  { %836 = vmatprep.mubr.msk.f32.mxu0 %vm245_vm1, %v41_v40  ;;  %197 = vperm.xlu0 %855, %v75_v45  }
  0x2c   :  { %837 = vmatmul.mubr.msk.f32.gmra.mxu0 %vm245_vm1, %v42_v42  ;;  %112 = vperm.xlu1 %856, %v58_v43  }
  0x2d   :  { %839 = vmatprep.mubr.msk.f32.mxu0 %vm245_vm1, %v43_v44  ;;  %192 = vperm.xlu0 %855, %v74_v49  }
  0x30   :  { %840 = vmatmul.mubr.msk.f32.gmra.mxu0 %vm245_vm1, %v44_v46  ;;  %107 = vperm.xlu1 %856, %v57_v47  }
  0x31   :  { %842 = vmatprep.mubr.msk.f32.mxu0 %vm245_vm1, %v45_v48  ;;  %187 = vperm.xlu0 %855, %v73_v53  }
  0x34   :  { %843 = vmatmul.mubr.msk.f32.gmra.mxu0 %vm245_vm1, %v46_v50  ;;  %102 = vperm.xlu1 %856, %v56_v51  }
  0x35   :  { %845 = vmatprep.mubr.msk.f32.mxu0 %vm245_vm1, %v47_v52  ;;  %182 = vperm.xlu0 %855, %v72_v57  }
  0x38   :  { %846 = vmatmul.mubr.msk.f32.gmra.mxu0 %vm245_vm1, %v48_v54  ;;  %97 = vperm.xlu1 %856, %v55_v55  }
  0x39   :  { %848 = vmatprep.mubr.msk.f32.mxu0 %vm245_vm1, %v49_v56  ;;  %177 = vperm.xlu0 %855, %v71_v61  }
  0x3c   :  { %849 = vmatmul.mubr.msk.f32.gmra.mxu0 %vm245_vm1, %v50_v58  ;;  %92 = vperm.xlu1 %856, %v54_v59  }
  0x3d   :  { %851 = vmatprep.mubr.msk.f32.mxu0 %vm245_vm1, %v51_v60  ;;  %172 = vperm.xlu0 %855, %v70_v0  }
  0x40   :  { %852 = vmatmul.mubr.msk.f32.gmra.mxu0 %vm245_vm1, %v52_v62  ;;  %87 = vperm.xlu1 %856, %v53_v63  }
  0x41   :  { %167 = vperm.xlu0 %855, %v69_v2  }
  0x44   :  { %616 = vperm.xlu1 %856, %v608_v1  }
  0x45   :  { %611 = vperm.xlu0 %855, %v607_v3  }
  0x7f   :  { %v238_v5 = vpop.permute.xlu1 %237 }
  0x80   :  { %v243_v6 = vpop.permute.xlu0 %242 }
  0x83   :  { %v158_v9 = vpop.permute.xlu1 %157 }
  0x84   :  { %v163_v10 = vpop.permute.xlu0 %162 }
  0x87   :  { %v153_v14 = vpop.permute.xlu1 %152 }
  0x88   :  { %v233_v15 = vpop.permute.xlu0 %232 }
  0x8b   :  { %v148_v19 = vpop.permute.xlu1 %147 }
  0x8c   :  { %v228_v20 = vpop.permute.xlu0 %227 }
  0x8f   :  { %v143_v24 = vpop.permute.xlu1 %142 }
  0x90   :  { %v223_v25 = vpop.permute.xlu0 %222 }
  0x93   :  { %v138_v29 = vpop.permute.xlu1 %137 }
  0x94   :  { %v218_v30 = vpop.permute.xlu0 %217 }
  0x97   :  { %v133_v34 = vpop.permute.xlu1 %132 }
  0x98   :  { %v213_v35 = vpop.permute.xlu0 %212 }
  0x9b   :  { %v128_v39 = vpop.permute.xlu1 %127 }
  0x9c   :  { %v208_v40 = vpop.permute.xlu0 %207 }
  0x9f   :  { %v123_v44 = vpop.permute.xlu1 %122 }
  0xa0   :  { %v203_v45 = vpop.permute.xlu0 %202 }
  0xa3   :  { %v118_v49 = vpop.permute.xlu1 %117 }
  0xa4   :  { %v198_v50 = vpop.permute.xlu0 %197 }
  0xa7   :  { %v113_v54 = vpop.permute.xlu1 %112 }
  0xa8   :  { %v193_v55 = vpop.permute.xlu0 %192 }
  0xab   :  { %v108_v62 = vpop.permute.xlu1 %107 }
  0xac   :  { %v188_v1 = vpop.permute.xlu0 %187 }
  0xc4   :  { %v1188_v7 = vpop.f32.mrf.mxu0 }
  0xc6   :  { %v1190_v8 = vpop.f32.mrf.mxu0 }
  0xc7   :  { %1257 = vst [vmem:[#allocation2_spill] sm:$0xff] %v1190_v8 }
  0xc8   :  { %v1192_v11 = vpop.f32.mrf.mxu0 }
  0xca   :  { %v1194_v12 = vpop.f32.mrf.mxu0 }
  0xcc   :  { %v1196_v13 = vpop.f32.mrf.mxu0 }
  0xce   :  { %v1198_v16 = vpop.f32.mrf.mxu0 }
  0xd0   :  { %v1200_v17 = vpop.f32.mrf.mxu0 }
  0xd2   :  { %v1202_v18 = vpop.f32.mrf.mxu0 }
  0xd4   :  { %v1204_v21 = vpop.f32.mrf.mxu0 }
  0xd6   :  { %v1206_v22 = vpop.f32.mrf.mxu0 }
  0xd8   :  { %v823_v23 = vpop.f32.mrf.mxu0 }
  0xda   :  { %v462_v26 = vpop.f32.mrf.mxu0 }
  0xdc   :  { %v826_v27 = vpop.f32.mrf.mxu0 }
  0xdd   :  { %v478_v2 = vadd.f32 %v826_v27, %v153_v14 }
  0xde   :  { %v472_v28 = vpop.f32.mrf.mxu0 }
  0xdf   :  { %v473_v4 = vadd.f32 %v472_v28, %v148_v19  ;;  %v453_v19 = vadd.f32 %v1206_v22, %v128_v39 }
  0xe0   :  { %v829_v31 = vpop.f32.mrf.mxu0 }
  0xe1   :  { %v488_v57 = vadd.f32 %v829_v31, %v163_v10  ;;  %v103_v10 = vpop.permute.xlu1 %102 }
  0xe2   :  { %v482_v32 = vpop.f32.mrf.mxu0 }
  0xe3   :  { %v483_v60 = vadd.f32 %v482_v32, %v158_v9  ;;  %v463_v9 = vadd.f32 %v462_v26, %v138_v29  ;;  %v438_v32 = vadd.f32 %v1196_v13, %v113_v54 }
  0xe4   :  { %v1208_v33 = vpop.f32.mrf.mxu0 }
  0xe6   :  { %v1210_v36 = vpop.f32.mrf.mxu0 }
  0xe7   :  { %1258 = vst [vmem:[#allocation3_spill] sm:$0xff] %v1210_v36  ;;  %v468_v36 = vadd.f32 %v823_v23, %v143_v24  ;;  %v448_v24 = vadd.f32 %v1200_v17, %v123_v44 }
  0xe8   :  { %v1212_v37 = vpop.f32.mrf.mxu0 }
  0xea   :  { %v1214_v38 = vpop.f32.mrf.mxu0 }
  0xec   :  { %v1216_v41 = vpop.f32.mrf.mxu0 }
  0xed   :  { %v518_v22 = vadd.f32 %v1216_v41, %v193_v55 }
  0xee   :  { %v1218_v42 = vpop.f32.mrf.mxu0 }
  0xf0   :  { %v841_v43 = vpop.f32.mrf.mxu0 }
  0xf2   :  { %v522_v46 = vpop.f32.mrf.mxu0 }
  0xf3   :  { %v523_v28 = vadd.f32 %v522_v46, %v198_v50  ;;  %v1259_v50 = vld [vmem:[#allocation3_spill] sm:$0xff] }
  0xf4   :  { %v844_v47 = vpop.f32.mrf.mxu0 }
  0xf6   :  { %v532_v48 = vpop.f32.mrf.mxu0 }
  0xf7   :  { %v533_v14 = vadd.f32 %v532_v48, %v208_v40 }
  0xf8   :  { %v847_v51 = vpop.f32.mrf.mxu0 }
  0xf9   :  { %v548_v8 = vadd.f32 %v847_v51, %v223_v25  ;;  %v528_v25 = vadd.f32 %v841_v43, %v203_v45  ;;  %v428_v43 = vadd.f32 %v1192_v11, %v103_v10 }
  0xfa   :  { %v542_v52 = vpop.f32.mrf.mxu0 }
  0xfb   :  { %v543_v31 = vadd.f32 %v542_v52, %v218_v30  ;;  %v1260_v52 = vld [vmem:[#allocation2_spill] sm:$0xff] }
  0xfc   :  { %v850_v53 = vpop.f32.mrf.mxu0 }
  0xfd   :  { %v558_v63 = vadd.f32 %v850_v53, %v233_v15  ;;  %v538_v15 = vadd.f32 %v844_v47, %v213_v35  ;;  %v513_v35 = vadd.f32 %v1218_v42, %v188_v1 }
  0xfe   :  { %v552_v56 = vpop.f32.mrf.mxu0 }
  0xff   :  { %v553_v3 = vadd.f32 %v552_v56, %v228_v20  ;;  %v98_v20 = vpop.permute.xlu1 %97 }
 0x100   :  { %v853_v58 = vpop.f32.mrf.mxu0 }
 0x101   :  { %v568_v59 = vadd.f32 %v853_v58, %v243_v6  ;;  %v183_v6 = vpop.permute.xlu0 %182 }
 0x102   :  { %v562_v61 = vpop.f32.mrf.mxu0  ;;  %v508_v41 = vadd.f32 %v1212_v37, %v183_v6  ;;  %v605_v6 = vld [vmem:[%s1255_s3 + $0x10] sm:$0xff] }
 0x103   :  { %857 = vtanh.f32 %v568_v59  ;;  %v563_v0 = vadd.f32 %v562_v61, %v238_v5  ;;  %v458_v5 = vadd.f32 %v1204_v21, %v133_v34  ;;  %v443_v21 = vadd.f32 %v1202_v18, %v118_v49  ;;  %v93_v34 = vpop.permute.xlu1 %92 }
 0x104   :  { %859 = vtanh.f32 %v488_v57  ;;  %v433_v18 = vadd.f32 %v1198_v16, %v108_v62  ;;  %v423_v16 = vadd.f32 %v1194_v12, %v98_v20  ;;  %v418_v11 = vadd.f32 %v1188_v7, %v93_v34 }
 0x105   :  { %861 = vtanh.f32 %v563_v0  ;;  %v178_v27 = vpop.permute.xlu0 %177 }
 0x106   :  { %863 = vtanh.f32 %v483_v60  ;;  %v503_v42 = vadd.f32 %v1214_v38, %v178_v27 }
 0x107   :  { %865 = vtanh.f32 %v558_v63  ;;  %v88_v47 = vpop.permute.xlu1 %87 }
 0x108   :  { %867 = vtanh.f32 %v478_v2  ;;  %v413_v53 = vadd.f32 %v1260_v52, %v88_v47 }
 0x109   :  { %869 = vtanh.f32 %v553_v3  ;;  %v173_v39 = vpop.permute.xlu0 %172 }
 0x10a   :  { %871 = vtanh.f32 %v473_v4  ;;  %v498_v37 = vadd.f32 %v1208_v33, %v173_v39  ;;  %v603_v4 = vld [vmem:[%s1255_s3] sm:$0xff] }
 0x10b   :  { %873 = vtanh.f32 %v548_v8 }
 0x10c   :  { %875 = vtanh.f32 %v468_v36 }
 0x10d   :  { %877 = vtanh.f32 %v543_v31  ;;  %v168_v49 = vpop.permute.xlu0 %167  ;;  %v606_v31 = vld [vmem:[%s1255_s3 + $0x18] sm:$0xff] }
 0x10e   :  { %879 = vtanh.f32 %v463_v9  ;;  %v493_v51 = vadd.f32 %v1259_v50, %v168_v49 }
 0x10f   :  { %881 = vtanh.f32 %v538_v15 }
 0x110   :  { %v858_v23 = vpop.eup %857  ;;  %883 = vtanh.f32 %v458_v5 }
 0x111   :  { %v860_v26 = vpop.eup %859  ;;  %885 = vtanh.f32 %v533_v14  ;;  %766 = vmatprep.subr.mxu1 %v858_v23  ;;  %v612_v14 = vpop.permute.xlu0 %611 }
 0x112   :  { %v862_v8 = vpop.eup %861  ;;  %887 = vtanh.f32 %v453_v19  ;;  %767 = vmatpush3.msra.mxu1 %v860_v26 }
 0x113   :  { %v864_v29 = vpop.eup %863  ;;  %889 = vtanh.f32 %v528_v25  ;;  %768 = vmatprep.subr.mxu1 %v862_v8 }
 0x114   :  { %v866_v30 = vpop.eup %865  ;;  %891 = vtanh.f32 %v448_v24  ;;  %769 = vmatpush3.msra.mxu1 %v864_v29  ;;  %v617_v24 = vpop.permute.xlu1 %616 }
 0x115   :  { %v868_v17 = vpop.eup %867  ;;  %893 = vtanh.f32 %v523_v28  ;;  %770 = vmatprep.subr.mxu1 %v866_v30 }
 0x116   :  { %v870_v36 = vpop.eup %869  ;;  %895 = vtanh.f32 %v443_v21  ;;  %771 = vmatpush3.msra.mxu1 %v868_v17 }
 0x117   :  { %v872_v40 = vpop.eup %871  ;;  %897 = vtanh.f32 %v518_v22  ;;  %772 = vmatprep.subr.mxu1 %v870_v36 }
 0x118   :  { %v874_v13 = vpop.eup %873  ;;  %899 = vtanh.f32 %v438_v32  ;;  %773 = vmatpush3.msra.mxu1 %v872_v40 }
 0x119   :  { %v876_v44 = vpop.eup %875  ;;  %901 = vtanh.f32 %v513_v35  ;;  %774 = vmatprep.subr.mxu1 %v874_v13 }
 0x11a   :  { %v878_v45 = vpop.eup %877  ;;  %903 = vtanh.f32 %v433_v18  ;;  %775 = vmatpush3.msra.mxu1 %v876_v44 }
 0x11b   :  { %v880_v46 = vpop.eup %879  ;;  %905 = vtanh.f32 %v508_v41  ;;  %776 = vmatprep.subr.mxu1 %v878_v45 }
 0x11c   :  { %v882_v48 = vpop.eup %881  ;;  %907 = vtanh.f32 %v428_v43  ;;  %777 = vmatpush3.msra.mxu1 %v880_v46 }
 0x11d   :  { %v884_v38 = vpop.eup %883  ;;  %909 = vtanh.f32 %v503_v42  ;;  %778 = vmatprep.subr.mxu1 %v882_v48 }
 0x11e   :  { %v886_v12 = vpop.eup %885  ;;  %911 = vtanh.f32 %v423_v16  ;;  %779 = vmatpush3.msra.mxu1 %v884_v38 }
 0x11f   :  { %v888_v54 = vpop.eup %887  ;;  %913 = vtanh.f32 %v498_v37  ;;  %780 = vmatprep.subr.mxu1 %v886_v12 }
 0x120   :  { %v890_v33 = vpop.eup %889  ;;  %915 = vtanh.f32 %v418_v11  ;;  %781 = vmatpush3.msra.mxu1 %v888_v54 }
 0x121   :  { %v892_v7 = vpop.eup %891  ;;  %917 = vtanh.f32 %v493_v51  ;;  %782 = vmatprep.subr.mxu1 %v890_v33 }
 0x122   :  { %v894_v55 = vpop.eup %893  ;;  %919 = vtanh.f32 %v413_v53  ;;  %783 = vmatpush3.msra.mxu1 %v892_v7 }
 0x123   :  { %v896_v56 = vpop.eup %895  ;;  %784 = vmatprep.subr.mxu1 %v894_v55 }
 0x124   :  { %v898_v57 = vpop.eup %897  ;;  %785 = vmatpush3.msra.mxu1 %v896_v56 }
 0x125   :  { %v900_v58 = vpop.eup %899  ;;  %786 = vmatprep.subr.mxu1 %v898_v57 }
 0x126   :  { %v902_v59 = vpop.eup %901  ;;  %787 = vmatpush3.msra.mxu1 %v900_v58 }
 0x127   :  { %v904_v60 = vpop.eup %903  ;;  %788 = vmatprep.subr.mxu1 %v902_v59 }
 0x128   :  { %v906_v61 = vpop.eup %905  ;;  %789 = vmatpush3.msra.mxu1 %v904_v60 }
 0x129   :  { %v908_v62 = vpop.eup %907  ;;  %790 = vmatprep.subr.mxu1 %v906_v61 }
 0x12a   :  { %v910_v63 = vpop.eup %909  ;;  %791 = vmatpush3.msra.mxu1 %v908_v62 }
 0x12b   :  { %v912_v0 = vpop.eup %911  ;;  %792 = vmatprep.subr.mxu1 %v910_v63 }
 0x12c   :  { %v914_v1 = vpop.eup %913  ;;  %793 = vmatpush3.msra.mxu1 %v912_v0 }
 0x12d   :  { %v916_v2 = vpop.eup %915  ;;  %794 = vmatprep.subr.mxu1 %v914_v1 }
 0x12e   :  { %v918_v3 = vpop.eup %917  ;;  %795 = vmatpush3.msra.mxu1 %v916_v2 }
 0x12f   :  { %v920_v10 = vpop.eup %919  ;;  %796 = vmatprep.subr.mxu1 %v918_v3 }
 0x130   :  { %797 = vmatpush3.msra.mxu1 %v920_v10 }
 0x131   :  { %684 = vmatmul.mubr.f32.vlgmr.msra.gmra.mxu1 %v603_v4 }
 0x132   :  { %688 = vmatprep.mubr.f32.mxu1 %v606_v31 }
 0x135   :  { %689 = vmatmul.mubr.f32.gmra.mxu1 %v605_v6 }
 0x1f1   :  { %v798_v9 = vpop.f32.mrf.mxu1 }
 0x1f3   :  { %v799_v15 = vpop.f32.mrf.mxu1 }
 0x1f4   :  { %v800_v5 = vadd.f32 %v799_v15, %v798_v9 }
 0x1f5   :  { %v801_v19 = vpop.f32.mrf.mxu1 }
 0x1f6   :  { %v686_v20 = vadd.f32 %v800_v5, %v612_v14 }
 0x1f7   :  { %v802_v25 = vpop.f32.mrf.mxu1 }
 0x1f8   :  { %694 = vst [vmem:[%s1256_s5] sm:$0xff] %v686_v20  ;;  %v803_v23 = vadd.f32 %v802_v25, %v801_v19 }
 0x1fa   :  { %v691_v27 = vadd.f32 %v803_v23, %v617_v24 }
 0x1fc   :  { %695 = vst [vmem:[%s1256_s5 + $0x8] sm:$0xff] %v691_v27 }

</bundles_post_ra>
